<compile_context>
chip_gen: v6e
topology: v6e:2x2x1
jax: 0.10.0
libtpu: 0.0.40
codegen_flags: <defaults>
</compile_context>

<pallas_src>
import functools

import jax
import jax.numpy as jnp
from jax.experimental import pallas as pl
from jax.experimental.pallas import tpu as pltpu


def _label_smoothing_kernel(logits_ref, target_ref, out_ref, *,
                            vocab_size, padding_idx, smoothing, confidence,
                            n_rows, row_tile):
    """One row tile: closed-form label-smoothed NLL -> per-block partial sum."""
    x = logits_ref[...].astype(jnp.float32)          # (TR, V) f32
    tgt = target_ref[...].astype(jnp.int32)          # (TR, 1)

    # Numerically stable log-softmax pieces.  The (TR, V) log_probs / shifted
    # tensors are never materialized: (x - m) only appears fused inside exp.
    m = jnp.max(x, axis=-1, keepdims=True)                            # (TR,1)
    sum_exp = jnp.sum(jnp.exp(x - m), axis=-1, keepdims=True)         # (TR,1)
    lse = jnp.log(sum_exp)                                            # (TR,1)

    v_f = jnp.float32(vocab_size)
    sum_x = jnp.sum(x, axis=-1, keepdims=True)                        # (TR,1)
    sum_logp = sum_x - v_f * m - v_f * lse          # = sum_v (x - m - lse)

    # log_prob at the target index via a lane-iota masked reduction.
    col = jax.lax.broadcasted_iota(jnp.int32, x.shape, 1)
    x_at_tgt = jnp.sum(jnp.where(col == tgt, x, 0.0), axis=-1, keepdims=True)
    logp_tgt = x_at_tgt - m - lse
    # log_prob at the padding column: static lane slice.
    logp_pad = x[:, padding_idx:padding_idx + 1] - m - lse

    smooth_val = jnp.float32(smoothing / (vocab_size - 1))
    conf = jnp.float32(confidence)
    # Closed form of -sum(true_dist * log_probs) for an unmasked row.
    row_loss = -((conf - smooth_val) * logp_tgt
                 + smooth_val * (sum_logp - logp_pad))                # (TR,1)

    # Rows whose target is <pad> contribute 0, and rows of the ragged last
    # block beyond n_rows (their logits are undefined, possibly inf/NaN after
    # exp) are dropped via select (NOT multiply), so NaN cannot leak.
    row_ids = (pl.program_id(0) * row_tile
               + jax.lax.broadcasted_iota(jnp.int32, (row_tile, 1), 0))
    valid = jnp.logical_and(row_ids < n_rows, tgt != padding_idx)
    row_loss = jnp.where(valid, row_loss, 0.0)

    # Per-block partial sum -> independent output block (parallel-friendly).
    out_ref[...] = jnp.sum(row_loss).reshape(1, 1, 1)


def _vmem_config():
    """(vmem_limit_bytes, per-step working budget) sized for this TPU generation."""
    cap = 64 * 1024 * 1024
    try:
        cap = int(getattr(pltpu.get_tpu_info(), "vmem_capacity_bytes", cap))
    except Exception:
        pass
    if cap >= 100 * 1024 * 1024:                      # v5e / v6e: 128 MiB VMEM
        return 100 * 1024 * 1024, 64 * 1024 * 1024
    return 56 * 1024 * 1024, 32 * 1024 * 1024         # v7x: 64 MiB physical/TC


def _pick_row_tile(n_rows, vocab_size, itemsize, working_budget, sublane):
    """Largest sublane-aligned row tile whose working set fits the budget.

    Working-set model per grid step: 2x input block (double buffering) plus
    ~3x (row_tile * V * 4B) of f32 intermediates (upcast + fused temps).
    """
    per_row = vocab_size * (2 * itemsize + 3 * 4)
    rt = max(sublane, working_budget // max(1, per_row))
    rt = min(rt, 1024)
    rounded_rows = -(-n_rows // sublane) * sublane
    # Keep >= 2 grid blocks whenever possible so the "parallel" grid axis can
    # be sharded across both TensorCores on v7x (harmless on v5e/v6e).
    if rounded_rows >= 2 * sublane:
        rt = min(rt, -(-rounded_rows // 2))
    rt = min(rt, rounded_rows)
    return max(sublane, (rt // sublane) * sublane)


def label_smoothing_loss(logits, target, *, vocab_size, padding_idx,
                         smoothing=0.1, row_tile=None):
    """logits: (N, V) float (f32 or bf16); target: (N,) int.  Mean loss."""
    n_rows, v = logits.shape
    assert v == vocab_size

    itemsize = jnp.dtype(logits.dtype).itemsize
    sublane = {4: 8, 2: 16, 1: 32}.get(itemsize, 8)
    vmem_limit_bytes, working_budget = _vmem_config()
    if row_tile is None:
        row_tile = _pick_row_tile(n_rows, v, itemsize, working_budget, sublane)
    # TODO(synk): for very large vocabularies (minimum row tile over budget),
    # add a V-chunked second grid axis with an online-softmax running max/sum.

    num_blocks = pl.cdiv(n_rows, row_tile)
    padded_rows = num_blocks * row_tile

    # Pad only the tiny target vector (padding_idx => contributes 0); the big
    # logits tensor is NOT copied — the ragged last block is masked in-kernel.
    tgt = target.astype(jnp.int32)
    if padded_rows != n_rows:
        tgt = jnp.pad(tgt, ((0, padded_rows - n_rows),),
                      constant_values=padding_idx)
    target2d = tgt.reshape(padded_rows, 1)

    kernel = functools.partial(
        _label_smoothing_kernel,
        vocab_size=vocab_size,
        padding_idx=padding_idx,
        smoothing=smoothing,
        confidence=1.0 - smoothing,
        n_rows=n_rows,
        row_tile=row_tile,
    )

    partials = pl.pallas_call(
        kernel,
        out_shape=jax.ShapeDtypeStruct((num_blocks, 1, 1), jnp.float32),
        grid_spec=pltpu.PrefetchScalarGridSpec(
            num_scalar_prefetch=0,
            grid=(num_blocks,),
            in_specs=[
                pl.BlockSpec((row_tile, v), lambda i: (i, 0)),
                pl.BlockSpec((row_tile, 1), lambda i: (i, 0)),
            ],
            out_specs=pl.BlockSpec((1, 1, 1), lambda i: (i, 0, 0)),
        ),
        compiler_params=pltpu.CompilerParams(
            dimension_semantics=("parallel",),
            vmem_limit_bytes=vmem_limit_bytes,
        ),
    )(logits, target2d)

    # torch.mean over the ORIGINAL rows (masked/padded rows contribute 0).
    return jnp.sum(partials) / jnp.float32(n_rows)


def _reference(logits, target, *, vocab_size, padding_idx, smoothing=0.1):
    confidence = 1.0 - smoothing
    log_probs = jax.nn.log_softmax(logits.astype(jnp.float32), axis=-1)
    n, v = logits.shape
    col = jnp.arange(v)[None, :]
    tgt = target[:, None]
    true_dist = jnp.where(col == tgt, confidence, smoothing / (vocab_size - 1))
    true_dist = jnp.where(col == padding_idx, 0.0, true_dist)
    true_dist = jnp.where(tgt == padding_idx, 0.0, true_dist)
    return jnp.mean(jnp.sum(-true_dist * log_probs, axis=-1))


if __name__ == "__main__":
    # Small shapes consistent with the module: batch=2, seq=8 -> N=16 rows,
    # vocab_size=128, padding_idx=0, smoothing=0.1.
    vocab_size = 128
    padding_idx = 0
    smoothing = 0.1
    batch, seq = 2, 8
    n_rows = batch * seq

    key = jax.random.PRNGKey(0)
    k_logits, k_target = jax.random.split(key)
    logits = jax.random.normal(k_logits, (n_rows, vocab_size), dtype=jnp.float32)
    target = jax.random.randint(k_target, (n_rows,), 0, vocab_size, dtype=jnp.int32)
    # Force a few padding positions to exercise the pad-row masking.
    target = target.at[3].set(padding_idx).at[10].set(padding_idx)

    loss = jax.block_until_ready(label_smoothing_loss(
        logits, target,
        vocab_size=vocab_size, padding_idx=padding_idx, smoothing=smoothing))
    ref = _reference(logits, target, vocab_size=vocab_size,
                     padding_idx=padding_idx, smoothing=smoothing)
    assert jnp.allclose(loss, ref, rtol=1e-5, atol=1e-5), (loss, ref)

    # Ragged row count: no wrapper-side pad of logits; the in-kernel validity
    # mask handles the last block and the mean divides by the original rows.
    n2 = 13
    loss2 = jax.block_until_ready(label_smoothing_loss(
        logits[:n2], target[:n2],
        vocab_size=vocab_size, padding_idx=padding_idx, smoothing=smoothing))
    ref2 = _reference(logits[:n2], target[:n2], vocab_size=vocab_size,
                      padding_idx=padding_idx, smoothing=smoothing)
    assert jnp.allclose(loss2, ref2, rtol=1e-5, atol=1e-5), (loss2, ref2)

    # bf16 logits path (halves HBM traffic; kernel upcasts for the math).
    logits_bf16 = logits.astype(jnp.bfloat16)
    loss3 = jax.block_until_ready(label_smoothing_loss(
        logits_bf16, target,
        vocab_size=vocab_size, padding_idx=padding_idx, smoothing=smoothing))
    ref3 = _reference(logits_bf16, target, vocab_size=vocab_size,
                      padding_idx=padding_idx, smoothing=smoothing)
    assert jnp.allclose(loss3, ref3, rtol=1e-4, atol=1e-5), (loss3, ref3)

    print("KERNEL_OK")
</pallas_src>

<mosaic_0001>
module attributes {stable_mosaic.version = 11 : i64} {
  func.func @_label_smoothing_kernel(%arg0: i32, %arg1: memref<8x128xf32, #tpu.memory_space<vmem>>, %arg2: memref<8x1xi32, #tpu.memory_space<vmem>>, %arg3: memref<1x1x1xf32, #tpu.memory_space<vmem>>) attributes {dimension_semantics = [#tpu.dimension_semantics<parallel>], iteration_bounds = array<i64: 2>, scalar_prefetch = 0 : i64, scratch_operands = 0 : i64, tpu.core_type = #tpu.core_type<tc>, window_params = [{transform_indices = @transform_0, window_bounds = array<i64: 8, 128>}, {transform_indices = @transform_1, window_bounds = array<i64: 8, 1>}, {transform_indices = @transform_2, window_bounds = array<i64: 1, 1, 1>}]} {
    %c0 = arith.constant 0 : index
    %c0_0 = arith.constant 0 : index
    %0 = vector.load %arg1[%c0, %c0_0] : memref<8x128xf32, #tpu.memory_space<vmem>>, vector<8x128xf32>
    %c0_1 = arith.constant 0 : index
    %c0_2 = arith.constant 0 : index
    %1 = vector.load %arg2[%c0_1, %c0_2] : memref<8x1xi32, #tpu.memory_space<vmem>>, vector<8x1xi32>
    %cst = arith.constant dense<0xFF800000> : vector<8xf32>
    %2 = vector.multi_reduction <maximumf>, %0, %cst [1] : vector<8x128xf32> to vector<8xf32>
    %3 = vector.shape_cast %2 : vector<8xf32> to vector<8x1xf32>
    %4 = vector.broadcast %3 : vector<8x1xf32> to vector<8x128xf32>
    %5 = arith.subf %0, %4 : vector<8x128xf32>
    %6 = math.exp %5 : vector<8x128xf32>
    %cst_3 = arith.constant dense<0.000000e+00> : vector<8xf32>
    %7 = vector.multi_reduction <add>, %6, %cst_3 [1] : vector<8x128xf32> to vector<8xf32>
    %8 = vector.shape_cast %7 : vector<8xf32> to vector<8x1xf32>
    %9 = math.log %8 : vector<8x1xf32>
    %cst_4 = arith.constant dense<0.000000e+00> : vector<8xf32>
    %10 = vector.multi_reduction <add>, %0, %cst_4 [1] : vector<8x128xf32> to vector<8xf32>
    %11 = vector.shape_cast %10 : vector<8xf32> to vector<8x1xf32>
    %cst_5 = arith.constant 1.280000e+02 : f32
    %12 = vector.broadcast %cst_5 : f32 to vector<8x1xf32>
    %13 = arith.mulf %12, %3 : vector<8x1xf32>
    %14 = arith.subf %11, %13 : vector<8x1xf32>
    %cst_6 = arith.constant 1.280000e+02 : f32
    %15 = vector.broadcast %cst_6 : f32 to vector<8x1xf32>
    %16 = arith.mulf %15, %9 : vector<8x1xf32>
    %17 = arith.subf %14, %16 : vector<8x1xf32>
    %18 = tpu.iota {dimensions = array<i32: 1>} : vector<8x128xi32>
    %19 = vector.broadcast %1 : vector<8x1xi32> to vector<8x128xi32>
    %20 = arith.cmpi eq, %18, %19 : vector<8x128xi32>
    %cst_7 = arith.constant 0.000000e+00 : f32
    %21 = vector.broadcast %cst_7 : f32 to vector<8x128xf32>
    %22 = arith.select %20, %0, %21 : vector<8x128xi1>, vector<8x128xf32>
    %cst_8 = arith.constant dense<0.000000e+00> : vector<8xf32>
    %23 = vector.multi_reduction <add>, %22, %cst_8 [1] : vector<8x128xf32> to vector<8xf32>
    %24 = vector.shape_cast %23 : vector<8xf32> to vector<8x1xf32>
    %25 = arith.subf %24, %3 : vector<8x1xf32>
    %26 = arith.subf %25, %9 : vector<8x1xf32>
    %27 = vector.extract_strided_slice %0 {offsets = [0, 0], sizes = [8, 1], strides = [1, 1]} : vector<8x128xf32> to vector<8x1xf32>
    %28 = arith.subf %27, %3 : vector<8x1xf32>
    %29 = arith.subf %28, %9 : vector<8x1xf32>
    %cst_9 = arith.constant 0.899999976 : f32
    %cst_10 = arith.constant 7.87401571E-4 : f32
    %30 = arith.subf %cst_9, %cst_10 : f32
    %31 = vector.broadcast %30 : f32 to vector<8x1xf32>
    %32 = arith.mulf %31, %26 : vector<8x1xf32>
    %33 = arith.subf %17, %29 : vector<8x1xf32>
    %cst_11 = arith.constant 7.87401571E-4 : f32
    %34 = vector.broadcast %cst_11 : f32 to vector<8x1xf32>
    %35 = arith.mulf %34, %33 : vector<8x1xf32>
    %36 = arith.addf %32, %35 : vector<8x1xf32>
    %cst_12 = arith.constant 0.000000e+00 : f32
    %37 = vector.broadcast %cst_12 : f32 to vector<8x1xf32>
    %38 = arith.subf %37, %36 : vector<8x1xf32>
    %c8_i32 = arith.constant 8 : i32
    %39 = arith.muli %arg0, %c8_i32 : i32
    %40 = tpu.iota {dimensions = array<i32: 0>} : vector<8x1xi32>
    %41 = vector.broadcast %39 : i32 to vector<8x1xi32>
    %42 = arith.addi %41, %40 : vector<8x1xi32>
    %c16_i32 = arith.constant 16 : i32
    %43 = vector.broadcast %c16_i32 : i32 to vector<8x1xi32>
    %44 = arith.cmpi slt, %42, %43 : vector<8x1xi32>
    %c0_i32 = arith.constant 0 : i32
    %45 = vector.broadcast %c0_i32 : i32 to vector<8x1xi32>
    %46 = arith.cmpi ne, %1, %45 : vector<8x1xi32>
    %47 = arith.andi %44, %46 : vector<8x1xi1>
    %cst_13 = arith.constant 0.000000e+00 : f32
    %48 = vector.broadcast %cst_13 : f32 to vector<8x1xf32>
    %49 = arith.select %47, %38, %48 : vector<8x1xi1>, vector<8x1xf32>
    %50 = vector.shape_cast %49 : vector<8x1xf32> to vector<1x8x1xf32>
    %cst_14 = arith.constant dense<0.000000e+00> : vector<1xf32>
    %51 = vector.multi_reduction <add>, %50, %cst_14 [1, 2] : vector<1x8x1xf32> to vector<1xf32>
    %52 = vector.shape_cast %51 : vector<1xf32> to vector<1x1x1xf32>
    %53 = vector.extract %52[0, 0, 0] : f32 from vector<1x1x1xf32>
    %54 = vector.broadcast %53 : f32 to vector<1x1x1xf32>
    %c0_15 = arith.constant 0 : index
    %c0_16 = arith.constant 0 : index
    %c0_17 = arith.constant 0 : index
    %55 = vector.load %arg3[%c0_15, %c0_16, %c0_17] : memref<1x1x1xf32, #tpu.memory_space<vmem>>, vector<1x1x1xf32>
    tpu.vector_store %arg3[%c0_15, %c0_16, %c0_17], %54 {strides = array<i32>} : memref<1x1x1xf32, #tpu.memory_space<vmem>>, vector<1x1x1xf32>,
    return
  }
  func.func @transform_0(%arg0: i32) -> (i32, i32) {
    %c0_i32 = arith.constant 0 : i32
    %c0_i32_0 = arith.constant 0 : i32
    return %arg0, %c0_i32 : i32, i32
  }
  func.func @transform_1(%arg0: i32) -> (i32, i32) {
    %c0_i32 = arith.constant 0 : i32
    %c0_i32_0 = arith.constant 0 : i32
    return %arg0, %c0_i32 : i32, i32
  }
  func.func @transform_2(%arg0: i32) -> (i32, i32, i32) {
    %c0_i32 = arith.constant 0 : i32
    %c0_i32_0 = arith.constant 0 : i32
    %c0_i32_1 = arith.constant 0 : i32
    return %arg0, %c0_i32, %c0_i32_0 : i32, i32, i32
  }
}

</mosaic_0001>

<bundles_post_ra>
// kernel: tpu_custom_call.1
= control target key start
LH: loop header
LB: loop body
LE: loop exit
PB: predicated region body
PF: predicated region fallthrough
CT: control target
= control target key end

     0   :  { %s320_s9 = smov 0   ;;  %s349_s0 = inlined_call_operand.vmem [shape: f32[16,128], index: 0, kind: input, shape index: {}]   ;;  %s350_s1 = inlined_call_operand.vmem [shape: s32[16,1], index: 1, kind: input, shape index: {}]   ;;  %s351_s2 = inlined_call_operand.vmem [shape: f32[2,1,1], index: 2, kind: output, shape index: {}]  }
   0x1 LB: > { %s326_s10 = sadd.s32 4294967295, %s302_s9   ;;  %p274_p0 = scmp.ge.s32.totalorder %s302_s9, 1  ;;  %s302_s9 = sphi %s320_s9, %s12_s9  }
   0x2   : > { %p120_p1 = scmp.lt.s32.totalorder %s302_s9, 3 }
   0x4   : > { %p121_p2 = pnand %p274_p0, %p120_p1 }
   0x5   : > { %p143_p3 = scmp.lt.s32.totalorder (!%p121_p2), %s326_s10, 1  ;;  %s277_s19 = sshll.u32 (!%p121_p2), %s326_s10, 3 }
   0x6   : > { %124 = sbr.rel (%p121_p2) target bundleno = 542 (0x21e), region = 28 }
   0xb   : > { %v304_v0 = vmov 0   ;;  %s332_s11 = scalar_select %p143_p3, %s326_s10, 1  ;;  %v171_v6 = vlaneseq  ;;  %v191_v18 = vstv %s277_s19  ;;  %vm197_vm4 = vcmask 7168  }
   0xc   : > { %291 = vset.pattern.permute.xlu0 %v304_v0  ;;  %vm209_vm5 = vcmask 0  }
   0xd   : > { %s275_s12 = sshll.u32 %s332_s11, 3  ;;  %v172_v7 = vand.u32 127, %v171_v6  ;;  %v190_v17 = vshrl.u32 %v171_v6, 7  ;;  %s153_s22 = scalar_lea.vmem %s351_s2, %s332_s11 }
   0xe   : > { %s146_s15 = scalar_lea.vmem %s349_s0, %s275_s12  ;;  %s150_s18 = scalar_lea.vmem %s350_s1, %s275_s12 }
   0xf   : > { %v154_v1 = vld [vmem:[%s146_s15] sm:$0xff]  ;;  %v192_v25 = vadd.s32 %v191_v18, %v190_v17 }
  0x10   : > { %156 = vmax.xlane.f32.xlu0 %v154_v1  ;;  %v155_v2 = vld [vmem:[%s150_s18] sm:$0xff] }
  0x11   : > { %vm194_vm1 = vcmp.ne.s32.totalorder %v155_v2, 0  ;;  %vm193_vm2 = vcmp.lt.s32.totalorder %v192_v25, 16 }
  0x12   : > { %vm195_vm3 = vmand %vm193_vm2, %vm194_vm1 }
  0x26   : > { %174 = vperm.xlu0 %291, %v155_v2  }
  0x99   : > { %v157_v3 = vpop.xlane.xlu0 %156 }
  0x9a   : > { %v158_v4 = vsub.f32 %v154_v1, %v157_v3  ;;  %v167_v16 = vmul.f32 128.0, %v157_v3 }
  0x9c   : > { %v159_v5 = vmul.f32 1.442695, %v158_v4 }
  0x9e   : > { %292 = vpow2.f32 %v159_v5 }
  0xa1   : > { %v175_v9 = vpop.permute.xlu0 %174 }
  0xa2   : > { %vm176_vm0 = vcmp.eq.s32.totalorder %v172_v7, %v175_v9 }
  0xa3   : > { %v177_v10 = vsel %vm176_vm0, %v154_v1, 0.0 }
  0xab   : > { %v293_v8 = vpop.eup %292 }
  0xac   : > { %161 = vadd.xlane.f32.xlu1 %v293_v8 }
  0xb0   : > { %165 = vadd.xlane.f32.xlu1 %v154_v1 }
  0xb4   : > { %178 = vadd.xlane.f32.xlu1 %v177_v10 }
 0x135   : > { %v162_v11 = vpop.xlane.xlu1 %161 }
 0x136   : > { %294 = vlog2.f32 %v162_v11 }
 0x139   : > { %v166_v12 = vpop.xlane.xlu1 %165 }
 0x13a   : > { %v168_v20 = vsub.f32 %v166_v12, %v167_v16 }
 0x13d   : > { %v179_v14 = vpop.xlane.xlu1 %178 }
 0x13e   : > { %v180_v21 = vsub.f32 %v179_v14, %v157_v3 }
 0x143   : > { %v295_v13 = vpop.eup %294 }
 0x144   : > { %v164_v15 = vmul.f32 0.6931472, %v295_v13 }
 0x146   : > { %v169_v19 = vmul.f32 128.0, %v164_v15  ;;  %v182_v22 = vsub.f32 %v158_v4, %v164_v15  ;;  %v181_v24 = vsub.f32 %v180_v21, %v164_v15 }
 0x148   : > { %v170_v23 = vsub.f32 %v168_v20, %v169_v19  ;;  %v183_v28 = vmul.f32 0.8992126, %v181_v24 }
 0x14a   : > { %v184_v26 = vsub.f32 %v170_v23, %v182_v22 }
 0x14c   : > { %v185_v27 = vmul.f32 0.0007874016, %v184_v26 }
 0x14e   : > { %v186_v29 = vadd.f32 %v185_v27, %v183_v28 }
 0x150   : > { %v187_v30 = vsub.f32 0.0, %v186_v29 }
 0x152   : > { %v196_v31 = vsel %vm195_vm3, %v187_v30, 0.0 }
 0x153   : > { %v198_v32 = vsel %vm197_vm4, %v196_v31, 0.0 }
 0x154   : > { %199 = vadd.xlane.f32.xlu1 %v198_v32 }
 0x1dd   : > { %v200_v33 = vpop.xlane.xlu1 %199 }
 0x1de   : > { %v201_v34 = vrot.slane %v200_v33, 4 }
 0x1e0   : > { %v202_v35 = vadd.f32 %v201_v34, %v200_v33 }
 0x1e2   : > { %v203_v36 = vrot.slane %v202_v35, 2 }
 0x1e4   : > { %v204_v37 = vadd.f32 %v203_v36, %v202_v35 }
 0x1e6   : > { %v205_v38 = vrot.slane %v204_v37, 1 }
 0x1e8   : > { %v206_v39 = vadd.f32 %v205_v38, %v204_v37 }
 0x1ea   : > { %280 = vpush %v206_v39 }
 0x21b   : > { %s281_s23 = spop %280 }
 0x21c   : > { %v208_v40 = vstv %s281_s23 }
 0x21d   : > { %210 = vst.msk [vmem:[%s153_s22] sm:$0x1] %vm209_vm5, %v208_v40 }
 0x21e PF: > { %s12_s9 = sadd.s32 1, %s302_s9  }
 0x21f   : > { %p9_p4 = scmp.ge.s32.totalorder %s12_s9, 4  }
 0x221   :  { %11 = sbr.rel (!%p9_p4) target bundleno = 1 (0x1), region = 61 }

</bundles_post_ra>
